<compile_context>
chip_gen: v6e
topology: v6e:2x2x1
jax: 0.10.0
libtpu: 0.0.40
codegen_flags: <defaults>
</compile_context>

<pallas_src>
import functools

import jax
import jax.numpy as jnp
from jax.experimental import pallas as pl
from jax.experimental.pallas import tpu as pltpu


def _aggregate_kernel(va_ref, vb_ref, w1a_ref, w1b_ref, b1_ref, w2_ref, b2_ref,
                      w3_ref, b3_ref, out_ref, sA_ref, sB_ref, *,
                      seq_len, block_s, mask_seq):
    s = pl.program_id(1)

    # Zero the per-batch-tile accumulators at the first seq step.
    @pl.when(s == 0)
    def _():
        sA_ref[...] = jnp.zeros_like(sA_ref)
        sB_ref[...] = jnp.zeros_like(sB_ref)

    va = va_ref[...].astype(jnp.float32)
    vb = vb_ref[...].astype(jnp.float32)

    if mask_seq:
        # Ragged seq tail: zero out positions >= seq_len (static shapes; VPU
        # select is free relative to the HBM-bound streaming).
        seq_ids = s * block_s + jax.lax.broadcasted_iota(
            jnp.int32, (1, block_s, va.shape[-1]), 1)
        valid = seq_ids < seq_len
        va = jnp.where(valid, va, 0.0)
        vb = jnp.where(valid, vb, 0.0)

    # Accumulate the sequence sum for this (TB, TS, H) tile in fp32.
    sA_ref[...] += jnp.sum(va, axis=1)
    sB_ref[...] += jnp.sum(vb, axis=1)

    # Epilogue: tiny MLP + classifier, once per batch tile.
    @pl.when(s == pl.num_programs(1) - 1)
    def _():
        # cat([sA, sB]) @ W1  ==  sA @ W1[:H] + sB @ W1[H:]  (no lane concat)
        h = (jnp.dot(sA_ref[...], w1a_ref[...], preferred_element_type=jnp.float32)
             + jnp.dot(sB_ref[...], w1b_ref[...], preferred_element_type=jnp.float32))
        h = jnp.maximum(h + b1_ref[...], 0.0)                           # ReLU
        h = jnp.dot(h, w2_ref[...], preferred_element_type=jnp.float32)
        h = jnp.maximum(h + b2_ref[...], 0.0)                           # ReLU
        y = jnp.dot(h, w3_ref[...], preferred_element_type=jnp.float32)
        out_ref[...] = (y + b3_ref[...]).astype(out_ref.dtype)


def aggregate_forward(V_A, V_B, params, *, max_block_b=128, max_block_s=512,
                      vmem_input_budget=24 << 20):
    """V_A, V_B: (B, S, H) float arrays. params: dict of kernel-layout weights."""
    B, S, H = V_A.shape
    assert V_B.shape == (B, S, H)
    num_outputs = params["w3"].shape[1]
    itemsize = jnp.dtype(V_A.dtype).itemsize

    # --- tile selection ------------------------------------------------------
    # Batch tile: full B when it fits (no alignment needed, single tile),
    # otherwise 128-row tiles (multiple of 8 for the 2-D output block).
    TB = B if B <= max_block_b else max_block_b
    # Seq tile: as large as fits the streamed-input VMEM budget
    # (2 inputs x 2 pipeline buffers), multiple of 8 unless it covers all of S.
    per_seq_row = 4 * TB * H * itemsize
    ts_cap = max(8, min(max_block_s, (vmem_input_budget // per_seq_row) // 8 * 8))
    TS = S if S <= ts_cap else ts_cap
    nb, ns = pl.cdiv(B, TB), pl.cdiv(S, TS)
    mask_seq = (S % TS) != 0

    # Split the (2H, H) first-layer weight so the kernel avoids a lane concat.
    w1a = params["w1"][:H]
    w1b = params["w1"][H:]

    weight_bytes = sum(int(p.size) * jnp.dtype(p.dtype).itemsize
                       for p in params.values())

    # VMEM: streamed inputs (double-buffered) + resident weights + scratch + out.
    vmem_need = (4 * TB * TS * H * itemsize
                 + 2 * weight_bytes
                 + 2 * TB * H * 4
                 + 2 * TB * max(num_outputs, 128) * 4
                 + (2 << 20))
    vmem_limit = int(min(max(vmem_need, 16 << 20), 64 << 20))

    cost = pl.CostEstimate(
        flops=2 * B * S * H                                     # seq-sum adds
              + 2 * B * (2 * H * H + H * H + H * num_outputs),  # MLP matmuls
        transcendentals=0,
        bytes_accessed=2 * B * S * H * itemsize + weight_bytes
                       + B * num_outputs * 4,
    )

    kernel = functools.partial(_aggregate_kernel,
                               seq_len=S, block_s=TS, mask_seq=mask_seq)

    grid_spec = pltpu.PrefetchScalarGridSpec(
        num_scalar_prefetch=0,
        grid=(nb, ns),
        in_specs=[
            pl.BlockSpec((TB, TS, H), lambda b, s: (b, s, 0)),          # V_A
            pl.BlockSpec((TB, TS, H), lambda b, s: (b, s, 0)),          # V_B
            pl.BlockSpec((H, H), lambda b, s: (0, 0)),                  # w1[:H]
            pl.BlockSpec((H, H), lambda b, s: (0, 0)),                  # w1[H:]
            pl.BlockSpec((1, H), lambda b, s: (0, 0)),                  # b1
            pl.BlockSpec((H, H), lambda b, s: (0, 0)),                  # w2
            pl.BlockSpec((1, H), lambda b, s: (0, 0)),                  # b2
            pl.BlockSpec((H, num_outputs), lambda b, s: (0, 0)),        # w3
            pl.BlockSpec((1, num_outputs), lambda b, s: (0, 0)),        # b3
        ],
        out_specs=pl.BlockSpec((TB, num_outputs), lambda b, s: (b, 0)),
        scratch_shapes=[pltpu.VMEM((TB, H), jnp.float32),               # sum(V_A)
                        pltpu.VMEM((TB, H), jnp.float32)],              # sum(V_B)
    )

    return pl.pallas_call(
        kernel,
        out_shape=jax.ShapeDtypeStruct((B, num_outputs), jnp.float32),
        grid_spec=grid_spec,
        compiler_params=pltpu.CompilerParams(
            dimension_semantics=("parallel", "arbitrary"),
            vmem_limit_bytes=vmem_limit,
        ),
        cost_estimate=cost,
    )(V_A, V_B, w1a, w1b,
      params["b1"], params["w2"], params["b2"], params["w3"], params["b3"])


def make_params(key, num_hiddens, num_outputs):
    """Deterministic synthetic parameters (PyTorch-Linear shapes, transposed)."""
    H = num_hiddens
    k = jax.random.split(key, 6)
    # mlp Linear 1: in=2H, out=H   (PyTorch weight (H, 2H) -> stored as (2H, H))
    w1 = jax.random.normal(k[0], (2 * H, H), jnp.float32) * 0.05
    b1 = jax.random.normal(k[1], (1, H), jnp.float32) * 0.05
    # mlp Linear 2: in=H, out=H
    w2 = jax.random.normal(k[2], (H, H), jnp.float32) * 0.05
    b2 = jax.random.normal(k[3], (1, H), jnp.float32) * 0.05
    # final Linear: in=H, out=num_outputs
    w3 = jax.random.normal(k[4], (H, num_outputs), jnp.float32) * 0.05
    b3 = jax.random.normal(k[5], (1, num_outputs), jnp.float32) * 0.05
    return {"w1": w1, "b1": b1, "w2": w2, "b2": b2, "w3": w3, "b3": b3}


def aggregate_reference(V_A, V_B, params):
    """Pure-JAX reference matching the PyTorch module (eval mode)."""
    sA = V_A.astype(jnp.float32).sum(axis=1)
    sB = V_B.astype(jnp.float32).sum(axis=1)
    x = jnp.concatenate([sA, sB], axis=1)
    h = jnp.maximum(x @ params["w1"] + params["b1"], 0.0)
    h = jnp.maximum(h @ params["w2"] + params["b2"], 0.0)
    return h @ params["w3"] + params["b3"]


if __name__ == "__main__":
    key = jax.random.PRNGKey(0)
    k_va, k_vb, k_p, k2a, k2b = jax.random.split(key, 5)

    num_hiddens, num_outputs = 32, 3
    params = make_params(k_p, num_hiddens, num_outputs)

    # Case 1: small shapes consistent with the module (batch=2, seq=8, hidden=32).
    B1, S1 = 2, 8
    V_A1 = jax.random.normal(k_va, (B1, S1, num_hiddens), jnp.float32)
    V_B1 = jax.random.normal(k_vb, (B1, S1, num_hiddens), jnp.float32)
    y1 = jax.block_until_ready(aggregate_forward(V_A1, V_B1, params))
    ref1 = aggregate_reference(V_A1, V_B1, params)
    assert y1.shape == (B1, num_outputs)
    assert jnp.allclose(y1, ref1, atol=1e-5, rtol=1e-5)

    # Case 2: ragged seq (in-kernel tail mask) + ragged batch tile
    # (Pallas-masked OOB output writes) + multi-step seq reduction.
    B2, S2 = 9, 20
    V_A2 = jax.random.normal(k2a, (B2, S2, num_hiddens), jnp.float32)
    V_B2 = jax.random.normal(k2b, (B2, S2, num_hiddens), jnp.float32)
    y2 = jax.block_until_ready(
        aggregate_forward(V_A2, V_B2, params, max_block_b=8, max_block_s=8))
    ref2 = aggregate_reference(V_A2, V_B2, params)
    assert y2.shape == (B2, num_outputs)
    assert jnp.allclose(y2, ref2, atol=1e-4, rtol=1e-4)

    print("KERNEL_OK")
</pallas_src>

<mosaic_0001>
module attributes {stable_mosaic.version = 11 : i64} {
  func.func @_aggregate_kernel(%arg0: i32, %arg1: i32, %arg2: memref<2x8x32xf32, #tpu.memory_space<vmem>>, %arg3: memref<2x8x32xf32, #tpu.memory_space<vmem>>, %arg4: memref<32x32xf32, #tpu.memory_space<vmem>>, %arg5: memref<32x32xf32, #tpu.memory_space<vmem>>, %arg6: memref<1x32xf32, #tpu.memory_space<vmem>>, %arg7: memref<32x32xf32, #tpu.memory_space<vmem>>, %arg8: memref<1x32xf32, #tpu.memory_space<vmem>>, %arg9: memref<32x3xf32, #tpu.memory_space<vmem>>, %arg10: memref<1x3xf32, #tpu.memory_space<vmem>>, %arg11: memref<2x3xf32, #tpu.memory_space<vmem>>, %arg12: memref<2x32xf32, #tpu.memory_space<vmem>>, %arg13: memref<2x32xf32, #tpu.memory_space<vmem>>) attributes {dimension_semantics = [#tpu.dimension_semantics<parallel>, #tpu.dimension_semantics<arbitrary>], iteration_bounds = array<i64: 1, 1>, scalar_prefetch = 0 : i64, scratch_operands = 2 : i64, tpu.core_type = #tpu.core_type<tc>, window_params = [{transform_indices = @transform_0, window_bounds = array<i64: 2, 8, 32>}, {transform_indices = @transform_1, window_bounds = array<i64: 2, 8, 32>}, {pipeline_mode = #tpu.pipeline_mode<synchronous>, transform_indices = @transform_2, window_bounds = array<i64: 32, 32>}, {pipeline_mode = #tpu.pipeline_mode<synchronous>, transform_indices = @transform_3, window_bounds = array<i64: 32, 32>}, {pipeline_mode = #tpu.pipeline_mode<synchronous>, transform_indices = @transform_4, window_bounds = array<i64: 1, 32>}, {pipeline_mode = #tpu.pipeline_mode<synchronous>, transform_indices = @transform_5, window_bounds = array<i64: 32, 32>}, {pipeline_mode = #tpu.pipeline_mode<synchronous>, transform_indices = @transform_6, window_bounds = array<i64: 1, 32>}, {pipeline_mode = #tpu.pipeline_mode<synchronous>, transform_indices = @transform_7, window_bounds = array<i64: 32, 3>}, {pipeline_mode = #tpu.pipeline_mode<synchronous>, transform_indices = @transform_8, window_bounds = array<i64: 1, 3>}, {transform_indices = @transform_9, window_bounds = array<i64: 2, 3>}]} {
    %c0_i32 = arith.constant 0 : i32
    %0 = arith.cmpi eq, %arg1, %c0_i32 : i32
    %1 = arith.extui %0 : i1 to i32
    %c0_i32_0 = arith.constant 0 : i32
    %2 = arith.cmpi ne, %1, %c0_i32_0 : i32
    scf.if %2 {
      %cst_17 = arith.constant 0.000000e+00 : f32
      %16 = vector.broadcast %cst_17 : f32 to vector<2x32xf32>
      %c0_18 = arith.constant 0 : index
      %c0_19 = arith.constant 0 : index
      %17 = vector.load %arg12[%c0_18, %c0_19] : memref<2x32xf32, #tpu.memory_space<vmem>>, vector<2x32xf32>
      tpu.vector_store %arg12[%c0_18, %c0_19], %16 {strides = array<i32>} : memref<2x32xf32, #tpu.memory_space<vmem>>, vector<2x32xf32>,
      %cst_20 = arith.constant 0.000000e+00 : f32
      %18 = vector.broadcast %cst_20 : f32 to vector<2x32xf32>
      %c0_21 = arith.constant 0 : index
      %c0_22 = arith.constant 0 : index
      %19 = vector.load %arg13[%c0_21, %c0_22] : memref<2x32xf32, #tpu.memory_space<vmem>>, vector<2x32xf32>
      tpu.vector_store %arg13[%c0_21, %c0_22], %18 {strides = array<i32>} : memref<2x32xf32, #tpu.memory_space<vmem>>, vector<2x32xf32>,
    } else {
    }
    %c0 = arith.constant 0 : index
    %c0_1 = arith.constant 0 : index
    %c0_2 = arith.constant 0 : index
    %3 = vector.load %arg2[%c0, %c0_1, %c0_2] : memref<2x8x32xf32, #tpu.memory_space<vmem>>, vector<2x8x32xf32>
    %c0_3 = arith.constant 0 : index
    %c0_4 = arith.constant 0 : index
    %c0_5 = arith.constant 0 : index
    %4 = vector.load %arg3[%c0_3, %c0_4, %c0_5] : memref<2x8x32xf32, #tpu.memory_space<vmem>>, vector<2x8x32xf32>
    %c0_6 = arith.constant 0 : index
    %c0_7 = arith.constant 0 : index
    %5 = vector.load %arg12[%c0_6, %c0_7] : memref<2x32xf32, #tpu.memory_space<vmem>>, vector<2x32xf32>
    %cst = arith.constant dense<0.000000e+00> : vector<2x32xf32>
    %6 = vector.multi_reduction <add>, %3, %cst [1] : vector<2x8x32xf32> to vector<2x32xf32>
    %7 = arith.addf %5, %6 : vector<2x32xf32>
    %c0_8 = arith.constant 0 : index
    %c0_9 = arith.constant 0 : index
    %8 = vector.load %arg12[%c0_8, %c0_9] : memref<2x32xf32, #tpu.memory_space<vmem>>, vector<2x32xf32>
    tpu.vector_store %arg12[%c0_8, %c0_9], %7 {strides = array<i32>} : memref<2x32xf32, #tpu.memory_space<vmem>>, vector<2x32xf32>,
    %c0_10 = arith.constant 0 : index
    %c0_11 = arith.constant 0 : index
    %9 = vector.load %arg13[%c0_10, %c0_11] : memref<2x32xf32, #tpu.memory_space<vmem>>, vector<2x32xf32>
    %cst_12 = arith.constant dense<0.000000e+00> : vector<2x32xf32>
    %10 = vector.multi_reduction <add>, %4, %cst_12 [1] : vector<2x8x32xf32> to vector<2x32xf32>
    %11 = arith.addf %9, %10 : vector<2x32xf32>
    %c0_13 = arith.constant 0 : index
    %c0_14 = arith.constant 0 : index
    %12 = vector.load %arg13[%c0_13, %c0_14] : memref<2x32xf32, #tpu.memory_space<vmem>>, vector<2x32xf32>
    tpu.vector_store %arg13[%c0_13, %c0_14], %11 {strides = array<i32>} : memref<2x32xf32, #tpu.memory_space<vmem>>, vector<2x32xf32>,
    %c0_i32_15 = arith.constant 0 : i32
    %13 = arith.cmpi eq, %arg1, %c0_i32_15 : i32
    %14 = arith.extui %13 : i1 to i32
    %c0_i32_16 = arith.constant 0 : i32
    %15 = arith.cmpi ne, %14, %c0_i32_16 : i32
    scf.if %15 {
      %c0_17 = arith.constant 0 : index
      %c0_18 = arith.constant 0 : index
      %16 = vector.load %arg12[%c0_17, %c0_18] : memref<2x32xf32, #tpu.memory_space<vmem>>, vector<2x32xf32>
      %c0_19 = arith.constant 0 : index
      %c0_20 = arith.constant 0 : index
      %17 = vector.load %arg4[%c0_19, %c0_20] : memref<32x32xf32, #tpu.memory_space<vmem>>, vector<32x32xf32>
      %cst_21 = arith.constant dense<0.000000e+00> : vector<2x32xf32>
      %18 = tpu.matmul %16, %17, %cst_21 {dimension_numbers = #tpu.dot_dimension_numbers<[1], [0], [0], [1], [0, 0, 1, 1], [], []>} : vector<2x32xf32>, vector<32x32xf32>, vector<2x32xf32> -> vector<2x32xf32>
      %c0_22 = arith.constant 0 : index
      %c0_23 = arith.constant 0 : index
      %19 = vector.load %arg13[%c0_22, %c0_23] : memref<2x32xf32, #tpu.memory_space<vmem>>, vector<2x32xf32>
      %c0_24 = arith.constant 0 : index
      %c0_25 = arith.constant 0 : index
      %20 = vector.load %arg5[%c0_24, %c0_25] : memref<32x32xf32, #tpu.memory_space<vmem>>, vector<32x32xf32>
      %cst_26 = arith.constant dense<0.000000e+00> : vector<2x32xf32>
      %21 = tpu.matmul %19, %20, %cst_26 {dimension_numbers = #tpu.dot_dimension_numbers<[1], [0], [0], [1], [0, 0, 1, 1], [], []>} : vector<2x32xf32>, vector<32x32xf32>, vector<2x32xf32> -> vector<2x32xf32>
      %22 = arith.addf %18, %21 : vector<2x32xf32>
      %c0_27 = arith.constant 0 : index
      %c0_28 = arith.constant 0 : index
      %23 = vector.load %arg6[%c0_27, %c0_28] : memref<1x32xf32, #tpu.memory_space<vmem>>, vector<1x32xf32>
      %24 = vector.broadcast %23 : vector<1x32xf32> to vector<2x32xf32>
      %25 = arith.addf %22, %24 : vector<2x32xf32>
      %cst_29 = arith.constant 0.000000e+00 : f32
      %26 = vector.broadcast %cst_29 : f32 to vector<2x32xf32>
      %27 = arith.maximumf %25, %26 : vector<2x32xf32>
      %c0_30 = arith.constant 0 : index
      %c0_31 = arith.constant 0 : index
      %28 = vector.load %arg7[%c0_30, %c0_31] : memref<32x32xf32, #tpu.memory_space<vmem>>, vector<32x32xf32>
      %cst_32 = arith.constant dense<0.000000e+00> : vector<2x32xf32>
      %29 = tpu.matmul %27, %28, %cst_32 {dimension_numbers = #tpu.dot_dimension_numbers<[1], [0], [0], [1], [0, 0, 1, 1], [], []>} : vector<2x32xf32>, vector<32x32xf32>, vector<2x32xf32> -> vector<2x32xf32>
      %c0_33 = arith.constant 0 : index
      %c0_34 = arith.constant 0 : index
      %30 = vector.load %arg8[%c0_33, %c0_34] : memref<1x32xf32, #tpu.memory_space<vmem>>, vector<1x32xf32>
      %31 = vector.broadcast %30 : vector<1x32xf32> to vector<2x32xf32>
      %32 = arith.addf %29, %31 : vector<2x32xf32>
      %cst_35 = arith.constant 0.000000e+00 : f32
      %33 = vector.broadcast %cst_35 : f32 to vector<2x32xf32>
      %34 = arith.maximumf %32, %33 : vector<2x32xf32>
      %c0_36 = arith.constant 0 : index
      %c0_37 = arith.constant 0 : index
      %35 = vector.load %arg9[%c0_36, %c0_37] : memref<32x3xf32, #tpu.memory_space<vmem>>, vector<32x3xf32>
      %cst_38 = arith.constant dense<0.000000e+00> : vector<2x3xf32>
      %36 = tpu.matmul %34, %35, %cst_38 {dimension_numbers = #tpu.dot_dimension_numbers<[1], [0], [0], [1], [0, 0, 1, 1], [], []>} : vector<2x32xf32>, vector<32x3xf32>, vector<2x3xf32> -> vector<2x3xf32>
      %c0_39 = arith.constant 0 : index
      %c0_40 = arith.constant 0 : index
      %37 = vector.load %arg10[%c0_39, %c0_40] : memref<1x3xf32, #tpu.memory_space<vmem>>, vector<1x3xf32>
      %38 = vector.broadcast %37 : vector<1x3xf32> to vector<2x3xf32>
      %39 = arith.addf %36, %38 : vector<2x3xf32>
      %c0_41 = arith.constant 0 : index
      %c0_42 = arith.constant 0 : index
      %40 = vector.load %arg11[%c0_41, %c0_42] : memref<2x3xf32, #tpu.memory_space<vmem>>, vector<2x3xf32>
      tpu.vector_store %arg11[%c0_41, %c0_42], %39 {strides = array<i32>} : memref<2x3xf32, #tpu.memory_space<vmem>>, vector<2x3xf32>,
    } else {
    }
    return
  }
  func.func @transform_0(%arg0: i32, %arg1: i32) -> (i32, i32, i32) {
    %c0_i32 = arith.constant 0 : i32
    %c0_i32_0 = arith.constant 0 : i32
    return %arg0, %arg1, %c0_i32 : i32, i32, i32
  }
  func.func @transform_1(%arg0: i32, %arg1: i32) -> (i32, i32, i32) {
    %c0_i32 = arith.constant 0 : i32
    %c0_i32_0 = arith.constant 0 : i32
    return %arg0, %arg1, %c0_i32 : i32, i32, i32
  }
  func.func @transform_2(%arg0: i32, %arg1: i32) -> (i32, i32) {
    %c0_i32 = arith.constant 0 : i32
    %c0_i32_0 = arith.constant 0 : i32
    %c0_i32_1 = arith.constant 0 : i32
    return %c0_i32, %c0_i32_0 : i32, i32
  }
  func.func @transform_3(%arg0: i32, %arg1: i32) -> (i32, i32) {
    %c0_i32 = arith.constant 0 : i32
    %c0_i32_0 = arith.constant 0 : i32
    %c0_i32_1 = arith.constant 0 : i32
    return %c0_i32, %c0_i32_0 : i32, i32
  }
  func.func @transform_4(%arg0: i32, %arg1: i32) -> (i32, i32) {
    %c0_i32 = arith.constant 0 : i32
    %c0_i32_0 = arith.constant 0 : i32
    %c0_i32_1 = arith.constant 0 : i32
    return %c0_i32, %c0_i32_0 : i32, i32
  }
  func.func @transform_5(%arg0: i32, %arg1: i32) -> (i32, i32) {
    %c0_i32 = arith.constant 0 : i32
    %c0_i32_0 = arith.constant 0 : i32
    %c0_i32_1 = arith.constant 0 : i32
    return %c0_i32, %c0_i32_0 : i32, i32
  }
  func.func @transform_6(%arg0: i32, %arg1: i32) -> (i32, i32) {
    %c0_i32 = arith.constant 0 : i32
    %c0_i32_0 = arith.constant 0 : i32
    %c0_i32_1 = arith.constant 0 : i32
    return %c0_i32, %c0_i32_0 : i32, i32
  }
  func.func @transform_7(%arg0: i32, %arg1: i32) -> (i32, i32) {
    %c0_i32 = arith.constant 0 : i32
    %c0_i32_0 = arith.constant 0 : i32
    %c0_i32_1 = arith.constant 0 : i32
    return %c0_i32, %c0_i32_0 : i32, i32
  }
  func.func @transform_8(%arg0: i32, %arg1: i32) -> (i32, i32) {
    %c0_i32 = arith.constant 0 : i32
    %c0_i32_0 = arith.constant 0 : i32
    %c0_i32_1 = arith.constant 0 : i32
    return %c0_i32, %c0_i32_0 : i32, i32
  }
  func.func @transform_9(%arg0: i32, %arg1: i32) -> (i32, i32) {
    %c0_i32 = arith.constant 0 : i32
    %c0_i32_0 = arith.constant 0 : i32
    return %arg0, %c0_i32 : i32, i32
  }
}

</mosaic_0001>

<bundles_post_ra>
// kernel: tpu_custom_call.1
= control target key start
LH: loop header
LB: loop body
LE: loop exit
PB: predicated region body
PF: predicated region fallthrough
CT: control target
= control target key end

     0   :  { %14 = vsyncpa [#allocation5], 0  ;;  %s845_s0 = inlined_call_operand.hbm [shape: f32[2,8,32], index: 0, kind: input, shape index: {}]   ;;  %s846_s1 = inlined_call_operand.hbm [shape: f32[2,8,32], index: 1, kind: input, shape index: {}]   ;;  %s847_s2 = inlined_call_operand.vmem [shape: f32[32,32], index: 2, kind: input, shape index: {}]   ;;  %s848_s3 = inlined_call_operand.hbm [shape: f32[32,32], index: 3, kind: input, shape index: {}]   ;;  %s849_s4 = inlined_call_operand.vmem [shape: f32[1,32], index: 4, kind: input, shape index: {}]   ;;  %s850_s5 = inlined_call_operand.hbm [shape: f32[32,32], index: 5, kind: input, shape index: {}]   ;;  %s851_s6 = inlined_call_operand.vmem [shape: f32[1,32], index: 6, kind: input, shape index: {}]   ;;  %s852_s7 = inlined_call_operand.vmem [shape: f32[32,3], index: 7, kind: input, shape index: {}]   ;;  %s853_s8 = inlined_call_operand.vmem [shape: f32[1,3], index: 8, kind: input, shape index: {}]   ;;  %s854_s9 = inlined_call_operand.hbm [shape: f32[2,3], index: 9, kind: output, shape index: {}]  }
   0x1   :  { %15 = vsyncpa [#allocation8], 0 }
   0x2   :  { %16 = vsyncpa [#allocation11], 0 }
   0x3   :  { %17 = vsyncpa [#allocation6], 0  ;;  %s688_s30 = smov [#allocation7]   ;;  %s689_s11 = smov [#allocation4]  }
   0x4   :  { %s35_s10 = sshll.u32 %s688_s30, 4  ;;  %s23_s12 = sshll.u32 %s689_s11, 4  ;;  %s36_s10 = int_to_ptr.vmem [resolvable:$true] %s35_s10  ;;  %s24_s12 = int_to_ptr.vmem [resolvable:$true] %s23_s12 }
   0x5   :  { %s588_s13 = scalar_lea.vmem %s36_s10, 256  ;;  %p593_p1 = scmp.lt.s32.totalorder %s36_s10, %s36_s10 }
   0x6   :  { %p589_p0 = scmp.ne.s32.totalorder %s36_s10, %s588_s13  ;;  %p594_p2 = scmp.lt.s32.totalorder %s588_s13, %s588_s13 }
   0x8   :  { %p595_p3 = por %p594_p2, %p593_p1 }
   0xa   :  { %p596_p4 = pnand %p595_p3, %p589_p0 }
   0xc   :  { %599 = shalt.err (!%p596_p4)
}
   0xd   :  { %s690_s14 = smov 128   ;;  %s691_s15 = smov 8  }
   0xe   :  { %41 = dma.hbm_to_vmem [thread:$0]  %s846_s1, 256, %s36_s10, [#allocation8], %s690_s14, %s690_s14, %s691_s15  }
   0xf   :  { %s608_s18 = scalar_lea.vmem %s24_s12, 256  ;;  %p613_p6 = scmp.lt.s32.totalorder %s24_s12, %s24_s12 }
  0x10   :  { %p609_p5 = scmp.ne.s32.totalorder %s24_s12, %s608_s18  ;;  %p614_p7 = scmp.lt.s32.totalorder %s608_s18, %s608_s18 }
  0x12   :  { %p615_p8 = por %p614_p7, %p613_p6 }
  0x14   :  { %p616_p9 = pnand %p615_p8, %p609_p5 }
  0x16   :  { %619 = shalt.err (!%p616_p9)
}
  0x17   :  { %29 = dma.hbm_to_vmem [thread:$0]  %s845_s0, 256, %s24_s12, [#allocation5], %s690_s14, %s690_s14, %s691_s15  }
  0x18   :  { %s692_s21 = smov [#allocation9]   ;;  %s693_s23 = smov [#allocation10]  }
  0x19   :  { %s49_s22 = sshll.u32 %s692_s21, 4  ;;  %s63_s24 = sshll.u32 %s693_s23, 4  ;;  %s50_s22 = int_to_ptr.vmem [resolvable:$true] %s49_s22  ;;  %s64_s24 = int_to_ptr.vmem [resolvable:$true] %s63_s24 }
  0x1a   :  { %s628_s1 = scalar_lea.vmem %s50_s22, 512  ;;  %p633_p11 = scmp.lt.s32.totalorder %s50_s22, %s50_s22 }
  0x1b   :  { %p629_p10 = scmp.ne.s32.totalorder %s50_s22, %s628_s1  ;;  %p634_p12 = scmp.lt.s32.totalorder %s628_s1, %s628_s1 }
  0x1d   :  { %p635_p13 = por %p634_p12, %p633_p11 }
  0x1f   :  { %p636_p0 = pnand %p635_p13, %p629_p10 }
  0x21   :  { %639 = shalt.err (!%p636_p0)
}
  0x22   :  { %55 = dma.hbm_to_vmem [thread:$0]  %s848_s3, 512, %s50_s22, [#allocation8], %s690_s14, %s690_s14, %s691_s15  }
  0x23   :  { %s648_s0 = scalar_lea.vmem %s64_s24, 512  ;;  %p653_p2 = scmp.lt.s32.totalorder %s64_s24, %s64_s24 }
  0x24   :  { %p649_p1 = scmp.ne.s32.totalorder %s64_s24, %s648_s0  ;;  %p654_p3 = scmp.lt.s32.totalorder %s648_s0, %s648_s0 }
  0x26   :  { %p655_p4 = por %p654_p3, %p653_p2 }
  0x28   :  { %p656_p5 = pnand %p655_p4, %p649_p1 }
  0x2a   :  { %659 = shalt.err (!%p656_p5)
}
  0x2b   :  { %69 = dma.hbm_to_vmem [thread:$0]  %s850_s5, 512, %s64_s24, [#allocation11], %s690_s14, %s690_s14, %s691_s15  }
  0x2c   :  { %680 = dma.done.wait [#allocation5], 256  }
  0x2d   :  { %681 = vsyncadd [#allocation5], 4294967040 }
  0x2e   :  { %682 = dma.done.wait [#allocation8], 768  }
  0x2f   :  { %683 = vsyncadd [#allocation8], 4294966528 }
  0x30   :  { %684 = dma.done.wait [#allocation11], 512  }
  0x31   :  { %685 = vsyncadd [#allocation11], 4294966784  ;;  %vm92_vm0 = vcmask 254976   ;;  %v694_v0 = vmov 0.0   ;;  %vm695_vm1 = vmmov 0   ;;  %v156_v1 = vld [vmem:[#allocation9 + $0x18] sm:$0xff] }
  0x32   :  { %527 = vmatprep.subr.mxu0 %v694_v0  ;;  %538 = vmatprep.subr.mxu1 %v694_v0  ;;  %94 = vst.msk [vmem:[#allocation3] sm:$0x3] %vm92_vm0, %v694_v0  ;;  %93 = vst.msk [vmem:[#allocation2] sm:$0x3] %vm92_vm0, %v694_v0  ;;  %v151_v2 = vld [vmem:[%s847_s2 + $0x18] sm:$0xff]  ;;  %vm100_vm2 = vcmask 261120  }
  0x33   :  { %535 = vmatprep.mubr.msk.f32.mxu0 %vm695_vm1, %v694_v0  ;;  %546 = vmatprep.mubr.msk.f32.mxu1 %vm695_vm1, %v694_v0  ;;  %v155_v3 = vld [vmem:[#allocation9 + $0x10] sm:$0xff]  ;;  %v154_v5 = vld [vmem:[#allocation9 + $0x8] sm:$0xff]  ;;  %v95_v7 = vld [vmem:[#allocation4] sm:$0xff]  ;;  %vm117_vm3 = vcmask 1041409   ;;  %s696_s25 = smov [#allocation12]   ;;  %vm481_vm4 = vcmask 17408  }
  0x34   :  { %528 = vmatpush3.msra.mxu0 %v156_v1  ;;  %539 = vmatpush3.msra.mxu1 %v151_v2  ;;  %v150_v4 = vld [vmem:[%s847_s2 + $0x10] sm:$0xff]  ;;  %v149_v6 = vld [vmem:[%s847_s2 + $0x8] sm:$0xff]  ;;  %v98_v10 = vld [vmem:[#allocation7 + $0x8] sm:$0xff]  ;;  %v101_v11 = vsel %vm100_vm2, %v95_v7, 0.0  ;;  %s489_s26 = sshll.u32 %s696_s25, 4  ;;  %s490_s26 = int_to_ptr.vmem [resolvable:$true] %s489_s26 }
  0x35   :  { %529 = vmatprep.subr.mxu0 %v694_v0  ;;  %540 = vmatprep.subr.mxu1 %v694_v0  ;;  %v96_v8 = vld [vmem:[#allocation4 + $0x8] sm:$0xff]  ;;  %v97_v9 = vld [vmem:[#allocation7] sm:$0xff]  ;;  %v153_v12 = vld [vmem:[#allocation9] sm:$0xff]  ;;  %v102_v14 = vrot.slane %v101_v11, 4  ;;  %v131_v17 = vsel %vm100_vm2, %v98_v10, 0.0  ;;  %p665_p7 = scmp.lt.s32.totalorder %s490_s26, %s490_s26 }
  0x36   :  { %530 = vmatpush3.msra.mxu0 %v155_v3  ;;  %541 = vmatpush3.msra.mxu1 %v150_v4  ;;  %v148_v13 = vld [vmem:[%s847_s2] sm:$0xff]  ;;  %v108_v15 = vsel %vm100_vm2, %v96_v8, 0.0  ;;  %v124_v16 = vsel %vm100_vm2, %v97_v9, 0.0  ;;  %v132_v20 = vrot.slane %v131_v17, 4  ;;  %v314_v50 = vld [vmem:[#allocation10 + $0x10] sm:$0xff]  ;;  %v313_v51 = vld [vmem:[#allocation10 + $0x8] sm:$0xff] }
  0x37   :  { %531 = vmatprep.subr.mxu0 %v694_v0  ;;  %542 = vmatprep.subr.mxu1 %v694_v0  ;;  %v109_v18 = vrot.slane %v108_v15, 4  ;;  %v125_v19 = vrot.slane %v124_v16, 4  ;;  %v103_v21 = vadd.f32 %v102_v14, %v101_v11  ;;  %v315_v49 = vld [vmem:[#allocation10 + $0x18] sm:$0xff]  ;;  %v312_v52 = vld [vmem:[#allocation10] sm:$0xff]  ;;  %v399_v62 = vld [vmem:[%s852_s7 + $0x10] sm:$0xff] }
  0x38   :  { %532 = vmatpush3.msra.mxu0 %v154_v5  ;;  %543 = vmatpush3.msra.mxu1 %v149_v6  ;;  %v133_v24 = vadd.f32 %v132_v20, %v131_v17  ;;  %v400_v53 = vld [vmem:[%s852_s7 + $0x18] sm:$0xff]  ;;  %v502_v56 = vld [vmem:[%s849_s4] ss:$0 sm:$0xff]  ;;  %v398_v63 = vld [vmem:[%s852_s7 + $0x8] sm:$0xff] }
  0x39   :  { %533 = vmatprep.subr.mxu0 %v694_v0  ;;  %544 = vmatprep.subr.mxu1 %v694_v0  ;;  %v110_v22 = vadd.f32 %v109_v18, %v108_v15  ;;  %v126_v23 = vadd.f32 %v125_v19, %v124_v16  ;;  %v104_v25 = vrot.slane %v103_v21, 2  ;;  %v123_v39 = vld [vmem:[#allocation3] sm:$0x3]  ;;  %v99_v42 = vld [vmem:[#allocation2] sm:$0x3] }
  0x3a   :  { %534 = vmatpush3.msra.mxu0 %v153_v12  ;;  %545 = vmatpush3.msra.mxu1 %v148_v13  ;;  %v134_v28 = vrot.slane %v133_v24, 2  ;;  %v397_v1 = vld [vmem:[%s852_s7] sm:$0xff]  ;;  %s660_s7 = scalar_lea.vmem %s490_s26, 32 }
  0x3b   :  { %549 = vmatprep.subr.mxu0 %v694_v0  ;;  %560 = vmatprep.subr.mxu1 %v694_v0  ;;  %v111_v26 = vrot.slane %v110_v22, 2  ;;  %v127_v27 = vrot.slane %v126_v23, 2  ;;  %v105_v29 = vadd.f32 %v104_v25, %v103_v21  ;;  %v503_v2 = vld [vmem:[%s851_s6] ss:$0 sm:$0xff]  ;;  %p661_p6 = scmp.ne.s32.totalorder %s490_s26, %s660_s7  ;;  %p666_p8 = scmp.lt.s32.totalorder %s660_s7, %s660_s7 }
  0x3c   :  { %v135_v32 = vadd.f32 %v134_v28, %v133_v24  ;;  %v505_v7 = vld [vmem:[%s853_s8] ss:$0 sm:$0xff] }
  0x3d   :  { %v112_v30 = vadd.f32 %v111_v26, %v110_v22  ;;  %v128_v31 = vadd.f32 %v127_v27, %v126_v23  ;;  %v106_v33 = vrot.slane %v105_v29, 1  ;;  %p667_p9 = por %p666_p8, %p665_p7 }
  0x3e   :  { %v136_v36 = vrot.slane %v135_v32, 1 }
  0x3f   :  { %v113_v34 = vrot.slane %v112_v30, 1  ;;  %v129_v35 = vrot.slane %v128_v31, 1  ;;  %v107_v37 = vadd.f32 %v106_v33, %v105_v29  ;;  %p668_p10 = pnand %p667_p9, %p661_p6 }
  0x40   :  { %v137_v41 = vadd.f32 %v136_v36, %v135_v32 }
  0x41   :  { %v114_v38 = vadd.f32 %v113_v34, %v112_v30  ;;  %v130_v40 = vadd.f32 %v129_v35, %v128_v31 }
  0x43   :  { %v118_v43 = vsel %vm117_vm3, %v114_v38, %v107_v37  ;;  %v140_v44 = vsel %vm117_vm3, %v137_v41, %v130_v40 }
  0x44   :  { %v142_v45 = vadd.f32 %v140_v44, %v123_v39  ;;  %v120_v46 = vadd.f32 %v118_v43, %v99_v42 }
  0x46   :  { %143 = vst.msk [vmem:[#allocation3] sm:$0x3] %vm92_vm0, %v142_v45  ;;  %122 = vst.msk [vmem:[#allocation2] sm:$0x3] %vm92_vm0, %v120_v46 }
  0x4d   :  { %v152_v47 = vld [vmem:[#allocation3] sm:$0x3]  ;;  %v147_v48 = vld [vmem:[#allocation2] sm:$0x3] }
  0x4e   :  { %536 = vmatmul.mubr.msk.f32.vlgmr.msra.gmra.mxu0 %vm100_vm2, %v152_v47  ;;  %547 = vmatmul.mubr.msk.f32.vlgmr.msra.gmra.mxu1 %vm100_vm2, %v147_v48 }
  0x4f   :  { %557 = vmatprep.mubr.msk.f32.mxu0 %vm695_vm1, %v694_v0  ;;  %568 = vmatprep.mubr.msk.f32.mxu1 %vm695_vm1, %v694_v0 }
  0x50   :  { %550 = vmatpush3.msra.mxu0 %v315_v49  ;;  %561 = vmatpush3.msra.mxu1 %v400_v53 }
  0x51   :  { %551 = vmatprep.subr.mxu0 %v694_v0  ;;  %562 = vmatprep.subr.mxu1 %v694_v0 }
  0x52   :  { %552 = vmatpush3.msra.mxu0 %v314_v50  ;;  %563 = vmatpush3.msra.mxu1 %v399_v62 }
  0x53   :  { %553 = vmatprep.subr.mxu0 %v694_v0  ;;  %564 = vmatprep.subr.mxu1 %v694_v0 }
  0x54   :  { %554 = vmatpush3.msra.mxu0 %v313_v51  ;;  %565 = vmatpush3.msra.mxu1 %v398_v63 }
  0x55   :  { %555 = vmatprep.subr.mxu0 %v694_v0  ;;  %566 = vmatprep.subr.mxu1 %v694_v0 }
  0x56   :  { %556 = vmatpush3.msra.mxu0 %v312_v52  ;;  %567 = vmatpush3.msra.mxu1 %v397_v1 }
 0x10e   :  { %v226_v54 = vpop.f32.mrf.mxu0  ;;  %v299_v55 = vpop.f32.mrf.mxu1 }
 0x10f   :  { %v300_v57 = vadd.f32 %v299_v55, %v226_v54 }
 0x110   :  { %v537_v58 = vpop.f32.mrf.mxu0  ;;  %v548_v59 = vpop.f32.mrf.mxu1 }
 0x111   :  { %v310_v60 = vadd.f32 %v502_v56, %v300_v57 }
 0x113   :  { %v311_v61 = vmax.f32 %v310_v60, 0.0 }
 0x115   :  { %558 = vmatmul.mubr.msk.f32.vlgmr.msra.gmra.mxu0 %vm100_vm2, %v311_v61 }
 0x1d5   :  { %v392_v3 = vpop.f32.mrf.mxu0 }
 0x1d6   :  { %v393_v4 = vadd.f32 %v503_v2, %v392_v3 }
 0x1d7   :  { %v559_v5 = vpop.f32.mrf.mxu0 }
 0x1d8   :  { %v396_v6 = vmax.f32 %v393_v4, 0.0 }
 0x1da   :  { %569 = vmatmul.mubr.msk.f32.vlgmr.msra.gmra.mxu1 %vm100_vm2, %v396_v6 }
 0x29a   :  { %v477_v0 = vpop.f32.mrf.mxu1 }
 0x29b   :  { %v478_v8 = vadd.f32 %v505_v7, %v477_v0 }
 0x29c   :  { %v570_v9 = vpop.f32.mrf.mxu1 }
 0x29d   :  { %482 = vst.msk [vmem:[#allocation12] sm:$0x3] %vm481_vm4, %v478_v8 }
 0x29e   :  { %671 = shalt.err (!%p668_p10)
}
 0x29f   :  { %492 = dma.vmem_to_hbm [thread:$0]  %s490_s26, 32, %s854_s9, [#allocation6]  }
 0x2a0   :  { %686 = dma.done.wait [#allocation6], 32  }
 0x2a1   :  { %687 = vsyncadd [#allocation6], 4294967264 }
 0x2a2   :  { %496 = vsyncpa [#allocation5], 1 }
 0x2a3   :  { %497 = vsyncpa [#allocation8], 1 }
 0x2a4   :  { %498 = vsyncpa [#allocation11], 1 }
 0x2a5   :  { %499 = vsyncpa [#allocation6], 1 }

</bundles_post_ra>
